<compile_context>
chip_gen: v6e
topology: v6e:2x2x1
jax: 0.10.0
libtpu: 0.0.40
codegen_flags: <defaults>
</compile_context>

<pallas_src>
import numpy as np

import jax
import jax.numpy as jnp
from jax.experimental import pallas as pl
from jax.experimental.pallas import tpu as pltpu


# ----------------------------- positional table (matches torch init) ----------------

def make_sinusoidal_table(max_len, num_hiddens):
    """AbsPositionalEncoding.P without the leading batch dim: (max_len, num_hiddens)."""
    P = np.zeros((max_len, num_hiddens), dtype=np.float32)
    X = (np.arange(max_len, dtype=np.float32)[:, None]
         / np.power(10000.0,
                    np.arange(0, num_hiddens, 2, dtype=np.float32) / num_hiddens))
    P[:, 0::2] = np.sin(X)
    P[:, 1::2] = np.cos(X)
    return jnp.asarray(P)


# ----------------------------- Pallas kernel -----------------------------------------

def _add_pe_kernel(x_ref, pos_ref, out_ref):
    # x block: (B, TL, C); pos block: (TL, C) broadcast over batch. VPU elementwise add.
    out_ref[...] = x_ref[...] + pos_ref[...]


def _choose_seq_tile(L, max_tile=512):
    """Largest multiple-of-8 tile that divides L, capped so there are >= 2 tiles.

    Falls back to the full sequence (single step) when L is small / not 8-aligned.
    Keeps per-tile VMEM bounded for large L and gives v7x's two TensorCores work.
    """
    if L < 16 or L % 8 != 0:
        return L
    best = 8
    cap = min(max_tile, L // 2)
    t = 8
    while t <= cap:
        if L % t == 0:
            best = t
        t += 8
    return best


def abs_positional_encoding(x, pos_table):
    """x: (B, L, C) float32, pos_table: (max_len, C). Returns x + pos_table[:L]."""
    B, L, C = x.shape
    pos = pos_table[:L]                      # P[:, :X.shape[1], :]
    tl = _choose_seq_tile(L)
    grid = (pl.cdiv(L, tl),)

    return pl.pallas_call(
        _add_pe_kernel,
        out_shape=jax.ShapeDtypeStruct((B, L, C), x.dtype),
        grid=grid,
        in_specs=[
            pl.BlockSpec((B, tl, C), lambda i: (0, i, 0)),   # activations
            pl.BlockSpec((tl, C), lambda i: (i, 0)),         # positional table slice
        ],
        out_specs=pl.BlockSpec((B, tl, C), lambda i: (0, i, 0)),
        compiler_params=pltpu.CompilerParams(
            dimension_semantics=("parallel",)),
    )(x, pos)


# ----------------------------- main ---------------------------------------------------

if __name__ == "__main__":
    B, L, C = 2, 16, 32        # (batch, seq, num_hiddens)
    max_len = 1000

    key = jax.random.PRNGKey(0)
    x = jax.random.normal(key, (B, L, C), dtype=jnp.float32)
    P = make_sinusoidal_table(max_len, C)

    out = jax.block_until_ready(abs_positional_encoding(x, P))
    assert out.shape == (B, L, C)

    # reference: X + P[:, :L, :] (eval-mode dropout is identity)
    ref = np.asarray(x) + np.asarray(P[:L])[None, :, :]
    np.testing.assert_allclose(np.asarray(out), ref, rtol=1e-6, atol=1e-6)

    print("KERNEL_OK")
</pallas_src>

<mosaic_0001>
module attributes {stable_mosaic.version = 11 : i64} {
  func.func @_add_pe_kernel(%arg0: i32, %arg1: memref<2x8x32xf32, #tpu.memory_space<vmem>>, %arg2: memref<8x32xf32, #tpu.memory_space<vmem>>, %arg3: memref<2x8x32xf32, #tpu.memory_space<vmem>>) attributes {dimension_semantics = [#tpu.dimension_semantics<parallel>], iteration_bounds = array<i64: 2>, scalar_prefetch = 0 : i64, scratch_operands = 0 : i64, tpu.core_type = #tpu.core_type<tc>, window_params = [{transform_indices = @transform_0, window_bounds = array<i64: 2, 8, 32>}, {transform_indices = @transform_1, window_bounds = array<i64: 8, 32>}, {transform_indices = @transform_2, window_bounds = array<i64: 2, 8, 32>}]} {
    %c0 = arith.constant 0 : index
    %c0_0 = arith.constant 0 : index
    %c0_1 = arith.constant 0 : index
    %0 = vector.load %arg1[%c0, %c0_0, %c0_1] : memref<2x8x32xf32, #tpu.memory_space<vmem>>, vector<2x8x32xf32>
    %c0_2 = arith.constant 0 : index
    %c0_3 = arith.constant 0 : index
    %1 = vector.load %arg2[%c0_2, %c0_3] : memref<8x32xf32, #tpu.memory_space<vmem>>, vector<8x32xf32>
    %2 = vector.shape_cast %1 : vector<8x32xf32> to vector<1x8x32xf32>
    %3 = vector.broadcast %2 : vector<1x8x32xf32> to vector<2x8x32xf32>
    %4 = arith.addf %0, %3 : vector<2x8x32xf32>
    %c0_4 = arith.constant 0 : index
    %c0_5 = arith.constant 0 : index
    %c0_6 = arith.constant 0 : index
    %5 = vector.load %arg3[%c0_4, %c0_5, %c0_6] : memref<2x8x32xf32, #tpu.memory_space<vmem>>, vector<2x8x32xf32>
    tpu.vector_store %arg3[%c0_4, %c0_5, %c0_6], %4 {strides = array<i32>} : memref<2x8x32xf32, #tpu.memory_space<vmem>>, vector<2x8x32xf32>,
    return
  }
  func.func @transform_0(%arg0: i32) -> (i32, i32, i32) {
    %c0_i32 = arith.constant 0 : i32
    %c0_i32_0 = arith.constant 0 : i32
    %c0_i32_1 = arith.constant 0 : i32
    return %c0_i32, %arg0, %c0_i32_0 : i32, i32, i32
  }
  func.func @transform_1(%arg0: i32) -> (i32, i32) {
    %c0_i32 = arith.constant 0 : i32
    %c0_i32_0 = arith.constant 0 : i32
    return %arg0, %c0_i32 : i32, i32
  }
  func.func @transform_2(%arg0: i32) -> (i32, i32, i32) {
    %c0_i32 = arith.constant 0 : i32
    %c0_i32_0 = arith.constant 0 : i32
    %c0_i32_1 = arith.constant 0 : i32
    return %c0_i32, %arg0, %c0_i32_0 : i32, i32, i32
  }
}

</mosaic_0001>

<bundles_post_ra>
// kernel: tpu_custom_call.1
= control target key start
LH: loop header
LB: loop body
LE: loop exit
PB: predicated region body
PF: predicated region fallthrough
CT: control target
= control target key end

     0   :  { %7 = vsyncpa [#allocation3], 0  ;;  %s743_s0 = inlined_call_operand.hbm [shape: f32[2,16,32], index: 0, kind: input, shape index: {}]   ;;  %s744_s1 = inlined_call_operand.hbm [shape: f32[16,32], index: 1, kind: input, shape index: {}]   ;;  %s745_s2 = inlined_call_operand.hbm [shape: f32[2,16,32], index: 2, kind: output, shape index: {}]  }
   0x1   :  { %9 = vsyncpa [#allocation3 + $0x1], 0 }
   0x2   :  { %10 = vsyncpa [#allocation6], 0 }
   0x3   :  { %12 = vsyncpa [#allocation6 + $0x1], 0 }
   0x4   :  { %13 = vsyncpa [#allocation4], 0 }
   0x5   :  { %15 = vsyncpa [#allocation4 + $0x1], 0  ;;  %s537_s9 = smov 0   ;;  %s539_s10 = smov 0  }
   0x6   :  { %s541_s11 = smov 0   ;;  %s543_s12 = smov 0  }
   0x7 LB: > { %s558_s13 = sadd.s32 4294967295, %s511_s12   ;;  %s315_s14 = sadd.s32 4294967294, %s511_s12   ;;  %s511_s12 = sphi %s543_s12, %s763_s12   ;;  %s507_s11 = sphi %s541_s11, %s762_s11   ;;  %s503_s10 = sphi %s539_s10, %s761_s10   ;;  %s499_s9 = sphi %s537_s9, %s760_s9  }
   0x8   : > { %s562_s15 = sadd.s32 1, %s511_s12   ;;  %s28_s16 = sadd.s32 1, %s507_s11 }
   0x9   : > { %s25_s17 = ssub.s32 %s511_s12, %s562_s15  ;;  %p35_p0 = scmp.ne.s32.totalorder %s507_s11, %s503_s10 }
   0xa   : > { %p26_p1 = scmp.eq.s32.totalorder %s25_s17, 0  ;;  %p36_p2 = scmp.eq.s32.totalorder %s511_s12, 0 }
   0xb   : > { %p41_p3 = scmp.ne.s32.totalorder %s503_s10, %s499_s9  ;;  %p42_p4 = scmp.eq.s32.totalorder %s558_s13, 0 }
   0xc   : > { %s574_s18 = scalar_select %p26_p1, %s507_s11, %s28_s16  }
   0xd   : > { %p576_p5 = por %p36_p2, %p35_p0  ;;  %p580_p6 = por %p42_p4, %p41_p3 }
   0xe   : > { %p91_p7 = scmp.eq.s32.totalorder %s558_s13, 1  ;;  %p97_p8 = scmp.eq.s32.totalorder %s315_s14, 1 }
   0xf   : > { %s749_s20 = scalar_select %p580_p6, 1, 0 }
  0x10   : > { %p347_p10 = scmp.lt.s32.totalorder %s511_s12, 2  ;;  %p587_p11 = por %p91_p7, %p35_p0 }
  0x11   : > { %p591_p12 = por %p97_p8, %p41_p3  ;;  %s596_s23 = sand.u32 1, %s507_s11  }
  0x12   : > { %s750_s21 = scalar_select %p587_p11, 1, 0 }
  0x13   : > { %s751_s22 = scalar_select %p591_p12, 1, 0 }
  0x14   : > { %s319_s24 = sshll.u32 %s511_s12, 7  ;;  %s318_s25 = sshll.u32 %s596_s23, 4 }
  0x15   : > { %s605_s28 = scalar_lea.hbm %s743_s0, %s319_s24  ;;  %s121_s29 = scalar_lea.vmem [#allocation2], %s318_s25 }
  0x16   : > { %s127_s30 = sshll.u32 %s121_s29, 4  ;;  %p609_p13 = pnand %p347_p10, %p576_p5  ;;  %s613_s30 = int_to_ptr.vmem [resolvable:$true] %s127_s30 }
  0x17   : > { %s118_s4 = scalar_lea.sflag [#allocation3], %s596_s23  ;;  %s387_s5 = scalar_lea.hbm %s605_s28, 256 }
  0x18   : > { %p388_p1 = scmp.ne.s32.totalorder %s605_s28, %s387_s5  ;;  %p389_p2 = pneg %p609_p13 }
  0x19   : > { %s392_s8 = scalar_lea.hbm %s743_s0, 512  ;;  %p393_p5 = scmp.lt.s32.totalorder %s605_s28, %s743_s0 }
  0x1a   : > { %p390_p3 = pnand %p389_p2, %p388_p1  ;;  %p394_p7 = scmp.lt.s32.totalorder %s392_s8, %s387_s5 }
  0x1c   : > { %p391_p4 = pneg %p390_p3  ;;  %p395_p8 = por %p394_p7, %p393_p5 }
  0x1e   : > { %p396_p10 = pnand %p395_p8, %p391_p4 }
  0x20   : > { %399 = shalt.err (!%p396_p10)
}
  0x21   : > { %s400_s17 = scalar_lea.vmem %s613_s30, 256  ;;  %s513_s19 = smov [#allocation2]  }
  0x22   : > { %p401_p9 = scmp.ne.s32.totalorder %s613_s30, %s400_s17  ;;  %s405_s25 = sshll.u32 %s513_s19, 4  ;;  %s406_s25 = int_to_ptr.vmem [resolvable:$false] %s405_s25 }
  0x23   : > { %s407_s26 = scalar_lea.vmem %s406_s25, 512  ;;  %p408_p0 = scmp.lt.s32.totalorder %s613_s30, %s406_s25 }
  0x24   : > { %p403_p1 = pnand %p401_p9, %p389_p2  ;;  %p409_p12 = scmp.lt.s32.totalorder %s407_s26, %s400_s17 }
  0x26   : > { %p404_p3 = pneg %p403_p1  ;;  %p410_p11 = por %p409_p12, %p408_p0 }
  0x28   : > { %p411_p5 = pnand %p410_p11, %p404_p3 }
  0x2a   : > { %414 = shalt.err (!%p411_p5)
}
  0x2b   : > { %s514_s27 = smov 256   ;;  %s515_s29 = smov 128  }
  0x2c   : > { %s516_s5 = smov 8   ;;  %p153_p9 = scmp.lt.s32.totalorder %s511_s12, 3 }
  0x2d   : > { %339 = dma.hbm_to_vmem [thread:$0]  (!%p609_p13), %s605_s28, 256, %s613_s30, %s118_s4, %s514_s27, %s515_s29, %s516_s5  }
  0x2e   : > { %s320_s6 = sshll.u32 %s596_s23, 3  ;;  %s650_s14 = scalar_lea.hbm %s744_s1, %s319_s24 }
  0x2f   : > { %p753_p11 = scmp.ge.s32.totalorder %s511_s12, 1  ;;  %s141_s17 = scalar_lea.vmem [#allocation5], %s320_s6 }
  0x30   : > { %s148_s19 = sshll.u32 %s141_s17, 4  ;;  %s138_s28 = scalar_lea.sflag [#allocation6], %s596_s23  ;;  %s149_s19 = int_to_ptr.vmem [resolvable:$true] %s148_s19 }
  0x31   : > { %p654_p12 = pnand %p753_p11, %p153_p9  ;;  %s415_s30 = scalar_lea.hbm %s650_s14, 128 }
  0x32   : > { %p416_p0 = scmp.ne.s32.totalorder %s650_s14, %s415_s30  ;;  %s420_s25 = scalar_lea.hbm %s744_s1, 256 }
  0x33   : > { %s754_s16 = scalar_select %p654_p12, 1, 0 }
  0x34   : > { %p418_p4 = pnand %p416_p0, %p389_p2  ;;  %p421_p8 = scmp.lt.s32.totalorder %s650_s14, %s744_s1 }
  0x35   : > { %p422_p10 = scmp.lt.s32.totalorder %s420_s25, %s415_s30 }
  0x36   : > { %p419_p7 = pneg %p418_p4 }
  0x37   : > { %p423_p1 = por %p422_p10, %p421_p8 }
  0x39   : > { %p424_p3 = pnand %p423_p1, %p419_p7 }
  0x3b   : > { %427 = shalt.err (!%p424_p3)
}
  0x3c   : > { %s428_s29 = scalar_lea.vmem %s149_s19, 128  ;;  %s517_s23 = smov [#allocation5]  }
  0x3d   : > { %p429_p5 = scmp.ne.s32.totalorder %s149_s19, %s428_s29  ;;  %s433_s5 = sshll.u32 %s517_s23, 4  ;;  %s434_s5 = int_to_ptr.vmem [resolvable:$false] %s433_s5 }
  0x3e   : > { %s435_s6 = scalar_lea.vmem %s434_s5, 256  ;;  %p436_p0 = scmp.lt.s32.totalorder %s149_s19, %s434_s5 }
  0x3f   : > { %p431_p9 = pnand %p429_p5, %p389_p2  ;;  %p437_p4 = scmp.lt.s32.totalorder %s435_s6, %s428_s29 }
  0x41   : > { %p432_p11 = pneg %p431_p9  ;;  %p438_p6 = por %p437_p4, %p436_p0 }
  0x43   : > { %p439_p12 = pnand %p438_p6, %p432_p11 }
  0x45   : > { %442 = shalt.err (!%p439_p12)
}
  0x46   : > { %342 = dma.hbm_to_vmem [thread:$0]  (!%p609_p13), %s650_s14, 128, %s149_s19, %s138_s28  }
  0x47   : > { %p755_p7 = scmp.ne.s32.totalorder %s754_s16, 0 }
  0x48   : > { %s680_s7 = sand.u32 (!%p755_p7), 1, %s503_s10   ;;  %p756_p2 = scmp.ne.s32.totalorder (!%p755_p7), %s749_s20, 0 }
  0x49   : > { %157 = sbr.rel (%p755_p7) target bundleno = 109 (0x6d), region = 28  ;;  %s323_s8 = sshll.u32 (!%p755_p7), %s680_s7, 4 }
  0x4a   : > { %s160_s17 = scalar_lea.sflag (!%p755_p7), [#allocation3], %s680_s7  ;;  %s163_s30 = scalar_lea.vmem (!%p755_p7), [#allocation2], %s323_s8 }
  0x4e   : > { %486 = dma.done.wait (%p756_p2), %s160_s17, 256  }
  0x4f   : > { %488 = vsyncadd (%p756_p2), %s160_s17, 4294967040  ;;  %s324_s3 = sshll.u32 %s680_s7, 3  ;;  %s169_s14 = scalar_lea.sflag [#allocation6], %s680_s7 }
  0x50   : > { %s172_s16 = scalar_lea.vmem [#allocation5], %s324_s3 }
  0x51   : > { %490 = dma.done.wait (%p756_p2), %s169_s14, 128  }
  0x52   : > { %492 = vsyncadd (%p756_p2), %s169_s14, 4294967168  ;;  %s197_s19 = scalar_lea.vmem [#allocation7], %s323_s8  ;;  %s327_s24 = sshll.u32 %s558_s13, 7  ;;  %v198_v0 = vld [vmem:[%s163_s30] sm:$0xff]  ;;  %vm203_vm0 = vcmask 261120   ;;  %v199_v2 = vld [vmem:[%s163_s30 + $0x8] sm:$0xff] }
  0x53   : > { %s219_s28 = sshll.u32 %s197_s19, 4  ;;  %v200_v1 = vld [vmem:[%s172_s16] sm:$0xff]  ;;  %s700_s20 = scalar_lea.hbm %s745_s2, %s327_s24  ;;  %s695_s28 = int_to_ptr.vmem [resolvable:$true] %s219_s28 }
  0x54   : > { %v201_v3 = vadd.f32 %v200_v1, %v198_v0  ;;  %v202_v4 = vadd.f32 %v200_v1, %v199_v2  ;;  %s207_s26 = scalar_lea.sflag [#allocation4], %s680_s7  ;;  %s443_s13 = scalar_lea.vmem %s695_s28, 256 }
  0x55   : > { %p444_p6 = scmp.ne.s32.totalorder %s695_s28, %s443_s13  ;;  %p757_p13 = scmp.ne.s32.totalorder %s750_s21, 0 }
  0x56   : > { %204 = vst.msk [vmem:[%s197_s19] sm:$0xff] %vm203_vm0, %v201_v3  ;;  %205 = vst.msk [vmem:[%s197_s19 + $0x8] sm:$0xff] %vm203_vm0, %v202_v4  ;;  %s518_s27 = smov [#allocation7]  }
  0x57   : > { %p445_p12 = pnand %p444_p6, %p757_p13  ;;  %s447_s29 = sshll.u32 %s518_s27, 4  ;;  %s448_s29 = int_to_ptr.vmem [resolvable:$false] %s447_s29 }
  0x58   : > { %s449_s23 = scalar_lea.vmem %s448_s29, 512  ;;  %p450_p10 = scmp.lt.s32.totalorder %s695_s28, %s448_s29 }
  0x59   : > { %p446_p8 = pneg %p445_p12  ;;  %p451_p1 = scmp.lt.s32.totalorder %s449_s23, %s443_s13 }
  0x5b   : > { %p452_p3 = por %p451_p1, %p450_p10 }
  0x5d   : > { %p453_p5 = pnand %p452_p3, %p446_p8 }
  0x5f   : > { %456 = shalt.err (!%p453_p5)
}
  0x60   : > { %s457_s5 = scalar_lea.hbm %s700_s20, 256  ;;  %s461_s17 = scalar_lea.hbm %s745_s2, 512 }
  0x61   : > { %p458_p9 = scmp.ne.s32.totalorder %s700_s20, %s457_s5  ;;  %p462_p4 = scmp.lt.s32.totalorder %s700_s20, %s745_s2 }
  0x62   : > { %p463_p7 = scmp.lt.s32.totalorder %s461_s17, %s457_s5 }
  0x63   : > { %p459_p11 = pnand %p458_p9, %p757_p13 }
  0x64   : > { %p464_p2 = por %p463_p7, %p462_p4 }
  0x65   : > { %p460_p0 = pneg %p459_p11 }
  0x67   : > { %p465_p6 = pnand %p464_p2, %p460_p0 }
  0x69   : > { %468 = shalt.err (!%p465_p6)
}
  0x6a   : > { %s519_s14 = smov 128   ;;  %s520_s16 = smov 256  }
  0x6b   : > { %s521_s19 = smov 8  }
  0x6c   : > { %334 = dma.vmem_to_hbm [thread:$0]  (%p757_p13), %s695_s28, 256, %s700_s20, %s207_s26, %s519_s14, %s520_s16, %s521_s19  }
  0x6d PF: > { %s234_s24 = sand.u32 1, %s499_s9   ;;  %p758_p12 = scmp.ne.s32.totalorder %s751_s22, 0 }
  0x6e   : > { %p759_p8 = scmp.ge.s32.totalorder %s511_s12, 2  ;;  %s235_s4 = scalar_lea.sflag [#allocation4], %s234_s24 }
  0x70   : > { %p344_p10 = pnand %p759_p8, %p758_p12 }
  0x72   : > { %p345_p1 = pneg %p344_p10 }
  0x74   : > { %494 = dma.done.wait (%p345_p1), %s235_s4, 256  }
  0x75   : > { %496 = vsyncadd (%p345_p1), %s235_s4, 4294967040  ;;  %p18_p3 = scmp.ge.s32.totalorder %s562_s15, 4   ;;  %s760_s9 = smov %s503_s10 }
  0x76   : > { %s761_s10 = smov %s507_s11  ;;  %s762_s11 = smov %s574_s18 }
  0x77   : > { %s763_s12 = smov %s562_s15  ;;  %20 = sbr.rel (!%p18_p3) target bundleno = 7 (0x7), region = 86 }
  0x7c   :  { %240 = vsyncpa [#allocation3], 1 }
  0x7d   :  { %242 = vsyncpa [#allocation3 + $0x1], 1 }
  0x7e   :  { %243 = vsyncpa [#allocation6], 1 }
  0x7f   :  { %245 = vsyncpa [#allocation6 + $0x1], 1 }
  0x80   :  { %246 = vsyncpa [#allocation4], 1 }
  0x81   :  { %248 = vsyncpa [#allocation4 + $0x1], 1 }

</bundles_post_ra>
